<compile_context>
chip_gen: v7x
topology: tpu7x:2x2x1
jax: 0.10.0
libtpu: 0.0.40
codegen_flags: <defaults>
</compile_context>

<pallas_src>
import functools
from types import SimpleNamespace

import jax
import jax.numpy as jnp
from jax import lax
from jax.experimental import pallas as pl
from jax.experimental.pallas import tpu as pltpu


def _round_up(x: int, m: int) -> int:
    return ((x + m - 1) // m) * m


# ----------------------------------------------------------------------------
# Pallas kernel: per-(term, batch-block) partial loss sums
# ----------------------------------------------------------------------------
def _loss_kernel(logits_ref, target_ref, out_ref, *, use_focal: bool,
                 batch_size: int, block_b: int):
    # logits_ref: (1, block_b, C) native dtype; target_ref: (block_b, 1) int32
    # out_ref   : (1, 1, 8, 128) f32  -- partial sum broadcast into a lane-dense tile
    logits = logits_ref[0].astype(jnp.float32)          # (block_b, C)
    tgt = target_ref[...]                               # (block_b, 1) int32
    bb, num_classes = logits.shape

    # Numerically stable log-softmax at the target class only (no full (bb, C)
    # log_probs materialized): logpt = z[target] - log(sum(exp(z)))
    m = jnp.max(logits, axis=1, keepdims=True)           # (bb, 1)
    z = logits - m                                       # (bb, C)
    ez = jnp.exp(z)
    sez = jnp.sum(ez, axis=1, keepdims=True)              # (bb, 1)

    cls = lax.broadcasted_iota(jnp.int32, (bb, num_classes), 1)
    onehot = cls == tgt                                   # (bb, C) bool
    # TODO(synk): PyTorch errors on out-of-range targets; here an OOB target
    # silently contributes logpt = -log(sez) (add pl.debug_check if desired).
    z_t = jnp.sum(jnp.where(onehot, z, 0.0), axis=1, keepdims=True)   # (bb, 1)
    logpt = z_t - jnp.log(sez)                            # (bb, 1)

    if use_focal:
        pt = jnp.exp(logpt)                               # softmax prob of target class
        one_m = 1.0 - pt
        om2 = one_m * one_m
        om3 = om2 * one_m
        om5 = om3 * om2
        # gamma dict {0.2: 5.0, 0.5: 3.0, 1: 1}: pt<0.2 -> (1-p)^5, pt<0.5 -> (1-p)^3,
        # else -> (1-p)^1
        factor = jnp.where(pt < 0.2, om5, jnp.where(pt < 0.5, om3, one_m))
        per_sample = -factor * logpt                      # (bb, 1)
    else:
        # F.cross_entropy == reduction of -log_softmax gathered at target
        per_sample = -logpt                               # (bb, 1)

    # Mask out padded rows of the final batch block (block may extend past B).
    i = pl.program_id(0)                                  # batch-block index
    row = i * block_b + lax.broadcasted_iota(jnp.int32, (bb, 1), 0)
    per_sample = jnp.where(row < batch_size, per_sample, 0.0)

    total = jnp.sum(per_sample)                           # scalar partial sum
    out_ref[...] = jnp.broadcast_to(total, out_ref.shape).astype(jnp.float32)


# ----------------------------------------------------------------------------
# Wrapper: one fused pallas_call over all stacked loss terms
# ----------------------------------------------------------------------------
def _run_loss_kernel(stacked_logits, target, *, use_focal: bool, reduction: str):
    """stacked_logits: (T, B, C) in native dtype; target: (B,) ints.
    Returns (T,) f32 per-term losses (mean or sum over batch)."""
    if reduction not in ('mean', 'sum'):
        raise ValueError('Unkown reduction method', reduction)
    T, B, C = stacked_logits.shape
    target2d = target.reshape(B, 1).astype(jnp.int32)

    # Tile the batch so Pallas double-buffers HBM->VMEM DMA against compute.
    # Budget ~2 MiB per in-flight logits buffer (x2 double-buffer) -> safe for
    # v7x's 64 MiB VMEM as well as v5e/v6e.
    itemsize = jnp.dtype(stacked_logits.dtype).itemsize
    bytes_per_row = max(C * itemsize, 1)
    budget = 2 * 1024 * 1024
    block_b = budget // bytes_per_row
    block_b = max(8, min(block_b, 1024, _round_up(B, 8)))
    block_b = max(8, (block_b // 8) * 8)
    nb = (B + block_b - 1) // block_b
    # TODO(synk): for very large num_classes (C * 4B exceeding a VMEM tile) a
    # class-axis grid with online max/sum accumulation would be required.

    kernel = functools.partial(_loss_kernel, use_focal=use_focal,
                               batch_size=B, block_b=block_b)

    flops = 8 * T * B * C                       # max/sub/exp-adjacent VPU work
    transcendentals = T * B * (C + 2)           # exp over C, log, exp(logpt)
    bytes_accessed = T * B * C * itemsize + B * 4 + T * nb * 8 * 128 * 4

    out = pl.pallas_call(
        kernel,
        out_shape=jax.ShapeDtypeStruct((T, nb, 8, 128), jnp.float32),
        grid=(nb, T),
        in_specs=[
            pl.BlockSpec((1, block_b, C), lambda i, t: (t, i, 0)),
            pl.BlockSpec((block_b, 1), lambda i, t: (i, 0)),
        ],
        out_specs=pl.BlockSpec((1, 1, 8, 128), lambda i, t: (t, i, 0, 0)),
        compiler_params=pltpu.CompilerParams(
            dimension_semantics=("parallel", "parallel")),
        cost_estimate=pl.CostEstimate(flops=flops,
                                      transcendentals=transcendentals,
                                      bytes_accessed=bytes_accessed),
    )(stacked_logits, target2d)

    per_term = jnp.sum(out[:, :, 0, 0], axis=1)           # (T,)
    if reduction == 'mean':
        per_term = per_term / jnp.float32(B)
    return per_term


# Single-term convenience wrappers (API parity with the PyTorch functions).
def adaptive_focal_loss(logits, target, reduction):
    return _run_loss_kernel(logits[None], target, use_focal=True,
                            reduction=reduction)[0]


def cross_entropy(logits, target, reduction):
    return _run_loss_kernel(logits[None], target, use_focal=False,
                            reduction=reduction)[0]


# ----------------------------------------------------------------------------
# computeLoss glue (plain JAX / Python bookkeeping, single fused kernel launch)
# ----------------------------------------------------------------------------
def computeLoss(args, output, target, resDict, reduction='mean'):
    if args.focal_weight > 0:
        use_focal = True
        weight = args.focal_weight if args.adv_ce_weight <= 0 else 0
        key = 'focal_loss'
    else:
        use_focal = False
        weight = args.nll_weight if args.adv_ce_weight <= 0 else 0
        key = 'loss_ce'

    terms = [(key, weight, output)]
    # TODO(synk): PGD adversarial-attack construction (adv_ce_weight > 0) depends on
    # torchattacks/GradCamMod at __init__ time; only precomputed resDict['output_adv']
    # is supported here.
    if args.adv_ce_weight > 0 and 'output_adv' in resDict:
        terms.append(('loss_adv', args.adv_ce_weight, resDict['output_adv']))
    if args.loss_on_masked:
        if args.adv_ce_weight > 0:
            weight_masked = 0
        elif args.focal_weight > 0:
            weight_masked = args.focal_weight
        else:
            weight_masked = args.nll_weight
        terms.append(('loss_masked', weight_masked, resDict['output_masked']))
        if args.adv_ce_weight > 0 and 'output_masked_adv' in resDict:
            terms.append(('loss_masked_adv', args.adv_ce_weight,
                          resDict['output_masked_adv']))

    # Fuse every loss term into ONE pallas_call (amortizes launch / pipeline warm-up).
    stacked = jnp.stack([t[2] for t in terms], axis=0)     # (T, B, C)
    per_term = _run_loss_kernel(stacked, target, use_focal=use_focal,
                                reduction=reduction)        # (T,)

    loss_dic = {}
    loss = jnp.float32(0.0)
    for idx, (k, w, _) in enumerate(terms):
        loss_term = per_term[idx]
        loss_dic[k] = loss_term[None]                       # .data.unsqueeze(0)
        loss = loss + w * loss_term
    loss_dic['loss'] = loss[None]
    return loss_dic


class Loss:
    """JAX/Pallas equivalent of the PyTorch Loss module's forward pass."""

    def __init__(self, args, reduction='mean', net=None):
        self.reduction = reduction
        self.args = args
        assert args.nll_weight > 0 or args.focal_weight > 0, \
            'Choose one loss function'
        assert not (args.nll_weight > 0 and args.focal_weight > 0), \
            'Cannot use the two loss functions'
        # (adv_ce_weight > 0 attack construction intentionally unsupported here)

    def forward(self, output, target, resDict):
        return computeLoss(self.args, output, target, resDict,
                           reduction=self.reduction)

    __call__ = forward


# ----------------------------------------------------------------------------
# main
# ----------------------------------------------------------------------------
if __name__ == "__main__":
    B, C = 8, 16   # batch, num_classes

    key = jax.random.PRNGKey(0)
    k1, k2, k3 = jax.random.split(key, 3)
    logits = jax.random.normal(k1, (B, C), dtype=jnp.float32)
    logits_masked = jax.random.normal(k2, (B, C), dtype=jnp.float32)
    target = jax.random.randint(k3, (B,), 0, C, dtype=jnp.int32)

    # adaptive focal loss path, also exercising the loss_on_masked branch
    # (both terms fused into one kernel launch)
    args = SimpleNamespace(focal_weight=1.0, nll_weight=0.0,
                           adv_ce_weight=0.0, loss_on_masked=True)
    loss_mod = Loss(args, reduction='mean')
    loss_dic = loss_mod(logits, target, {'output_masked': logits_masked})
    jax.block_until_ready(loss_dic['loss'])

    # also run the plain cross-entropy path once
    args_ce = SimpleNamespace(focal_weight=0.0, nll_weight=1.0,
                              adv_ce_weight=0.0, loss_on_masked=False)
    loss_dic_ce = Loss(args_ce, reduction='mean')(logits, target, {})
    jax.block_until_ready(loss_dic_ce['loss'])

    print("KERNEL_OK")
</pallas_src>

<mosaic_0001>
module attributes {stable_mosaic.version = 11 : i64} {
  func.func @_loss_kernel(%arg0: i32, %arg1: i32, %arg2: memref<1x8x16xf32, #tpu.memory_space<vmem>>, %arg3: memref<8x1xi32, #tpu.memory_space<vmem>>, %arg4: memref<1x1x8x128xf32, #tpu.memory_space<vmem>>) attributes {dimension_semantics = [#tpu.dimension_semantics<parallel>, #tpu.dimension_semantics<parallel>], iteration_bounds = array<i64: 1, 2>, scalar_prefetch = 0 : i64, scratch_operands = 0 : i64, tpu.core_type = #tpu.core_type<tc>, window_params = [{transform_indices = @transform_0, window_bounds = array<i64: 1, 8, 16>}, {transform_indices = @transform_1, window_bounds = array<i64: 8, 1>}, {transform_indices = @transform_2, window_bounds = array<i64: 1, 1, 8, 128>}]} {
    %c0 = arith.constant 0 : index
    %c0_0 = arith.constant 0 : index
    %c0_1 = arith.constant 0 : index
    %0 = vector.load %arg2[%c0, %c0_0, %c0_1] : memref<1x8x16xf32, #tpu.memory_space<vmem>>, vector<1x8x16xf32>
    %1 = vector.shape_cast %0 : vector<1x8x16xf32> to vector<8x16xf32>
    %c0_2 = arith.constant 0 : index
    %c0_3 = arith.constant 0 : index
    %2 = vector.load %arg3[%c0_2, %c0_3] : memref<8x1xi32, #tpu.memory_space<vmem>>, vector<8x1xi32>
    %cst = arith.constant dense<0xFF800000> : vector<8xf32>
    %3 = vector.multi_reduction <maximumf>, %1, %cst [1] : vector<8x16xf32> to vector<8xf32>
    %4 = vector.shape_cast %3 : vector<8xf32> to vector<8x1xf32>
    %5 = vector.broadcast %4 : vector<8x1xf32> to vector<8x16xf32>
    %6 = arith.subf %1, %5 : vector<8x16xf32>
    %7 = math.exp %6 : vector<8x16xf32>
    %cst_4 = arith.constant dense<0.000000e+00> : vector<8xf32>
    %8 = vector.multi_reduction <add>, %7, %cst_4 [1] : vector<8x16xf32> to vector<8xf32>
    %9 = vector.shape_cast %8 : vector<8xf32> to vector<8x1xf32>
    %10 = tpu.iota {dimensions = array<i32: 1>} : vector<8x16xi32>
    %11 = vector.broadcast %2 : vector<8x1xi32> to vector<8x16xi32>
    %12 = arith.cmpi eq, %10, %11 : vector<8x16xi32>
    %cst_5 = arith.constant 0.000000e+00 : f32
    %13 = vector.broadcast %cst_5 : f32 to vector<8x16xf32>
    %14 = arith.select %12, %6, %13 : vector<8x16xi1>, vector<8x16xf32>
    %cst_6 = arith.constant dense<0.000000e+00> : vector<8xf32>
    %15 = vector.multi_reduction <add>, %14, %cst_6 [1] : vector<8x16xf32> to vector<8xf32>
    %16 = vector.shape_cast %15 : vector<8xf32> to vector<8x1xf32>
    %17 = math.log %9 : vector<8x1xf32>
    %18 = arith.subf %16, %17 : vector<8x1xf32>
    %19 = math.exp %18 : vector<8x1xf32>
    %cst_7 = arith.constant 1.000000e+00 : f32
    %20 = vector.broadcast %cst_7 : f32 to vector<8x1xf32>
    %21 = arith.subf %20, %19 : vector<8x1xf32>
    %22 = arith.mulf %21, %21 : vector<8x1xf32>
    %23 = arith.mulf %22, %21 : vector<8x1xf32>
    %24 = arith.mulf %23, %22 : vector<8x1xf32>
    %cst_8 = arith.constant 2.000000e-01 : f32
    %25 = vector.broadcast %cst_8 : f32 to vector<8x1xf32>
    %26 = arith.cmpf olt, %19, %25 : vector<8x1xf32>
    %cst_9 = arith.constant 5.000000e-01 : f32
    %27 = vector.broadcast %cst_9 : f32 to vector<8x1xf32>
    %28 = arith.cmpf olt, %19, %27 : vector<8x1xf32>
    %29 = arith.select %28, %23, %21 : vector<8x1xi1>, vector<8x1xf32>
    %30 = arith.select %26, %24, %29 : vector<8x1xi1>, vector<8x1xf32>
    %cst_10 = arith.constant 0.000000e+00 : f32
    %31 = vector.broadcast %cst_10 : f32 to vector<8x1xf32>
    %32 = arith.subf %31, %30 : vector<8x1xf32>
    %33 = arith.mulf %32, %18 : vector<8x1xf32>
    %c8_i32 = arith.constant 8 : i32
    %34 = arith.muli %arg0, %c8_i32 : i32
    %35 = tpu.iota {dimensions = array<i32: 0>} : vector<8x1xi32>
    %36 = vector.broadcast %34 : i32 to vector<8x1xi32>
    %37 = arith.addi %36, %35 : vector<8x1xi32>
    %c8_i32_11 = arith.constant 8 : i32
    %38 = vector.broadcast %c8_i32_11 : i32 to vector<8x1xi32>
    %39 = arith.cmpi slt, %37, %38 : vector<8x1xi32>
    %cst_12 = arith.constant 0.000000e+00 : f32
    %40 = vector.broadcast %cst_12 : f32 to vector<8x1xf32>
    %41 = arith.select %39, %33, %40 : vector<8x1xi1>, vector<8x1xf32>
    %42 = vector.shape_cast %41 : vector<8x1xf32> to vector<1x8x1xf32>
    %cst_13 = arith.constant dense<0.000000e+00> : vector<1xf32>
    %43 = vector.multi_reduction <add>, %42, %cst_13 [1, 2] : vector<1x8x1xf32> to vector<1xf32>
    %44 = vector.shape_cast %43 : vector<1xf32> to vector<1x1x1xf32>
    %45 = vector.extract %44[0, 0, 0] : f32 from vector<1x1x1xf32>
    %46 = vector.broadcast %45 : f32 to vector<1x1x8x128xf32>
    %c0_14 = arith.constant 0 : index
    %c0_15 = arith.constant 0 : index
    %c0_16 = arith.constant 0 : index
    %c0_17 = arith.constant 0 : index
    %47 = vector.load %arg4[%c0_14, %c0_15, %c0_16, %c0_17] : memref<1x1x8x128xf32, #tpu.memory_space<vmem>>, vector<1x1x8x128xf32>
    tpu.vector_store %arg4[%c0_14, %c0_15, %c0_16, %c0_17], %46 {strides = array<i32>} : memref<1x1x8x128xf32, #tpu.memory_space<vmem>>, vector<1x1x8x128xf32>,
    return
  }
  func.func @transform_0(%arg0: i32, %arg1: i32) -> (i32, i32, i32) {
    %c0_i32 = arith.constant 0 : i32
    %c0_i32_0 = arith.constant 0 : i32
    return %arg1, %arg0, %c0_i32 : i32, i32, i32
  }
  func.func @transform_1(%arg0: i32, %arg1: i32) -> (i32, i32) {
    %c0_i32 = arith.constant 0 : i32
    %c0_i32_0 = arith.constant 0 : i32
    return %arg0, %c0_i32 : i32, i32
  }
  func.func @transform_2(%arg0: i32, %arg1: i32) -> (i32, i32, i32, i32) {
    %c0_i32 = arith.constant 0 : i32
    %c0_i32_0 = arith.constant 0 : i32
    %c0_i32_1 = arith.constant 0 : i32
    return %arg1, %arg0, %c0_i32, %c0_i32_0 : i32, i32, i32, i32
  }
}

</mosaic_0001>

<bundles_post_ra>
// kernel: tpu_custom_call.1
= control target key start
LH: loop header
LB: loop body
LE: loop exit
PB: predicated region body
PF: predicated region fallthrough
CT: control target
= control target key end

     0   :  { %7 = vsyncpa [#allocation3], 0  ;;  %s760_s0 = inlined_call_operand.hbm [shape: f32[2,8,16], index: 0, kind: input, shape index: {}]   ;;  %s761_s1 = inlined_call_operand.vmem [shape: s32[8,1], index: 1, kind: input, shape index: {}]   ;;  %s762_s2 = inlined_call_operand.hbm [shape: f32[2,1,8,128], index: 2, kind: output, shape index: {}]  }
   0x1   :  { %9 = vsyncpa [#allocation3 + $0x1], 0 }
   0x2   :  { %10 = vsyncpa [#allocation4], 0 }
   0x3   :  { %12 = vsyncpa [#allocation4 + $0x1], 0  ;;  %s578_s9 = smov 0   ;;  %s580_s10 = smov 0  }
   0x4   :  { %s582_s11 = smov 0   ;;  %s584_s12 = smov 0  }
   0x5   :  { %s586_s13 = smov 0   ;;  %s588_s14 = smov 0  }
   0x6 LB: > { %s360_s15 = sadd.s32 4294967295, %s558_s14   ;;  %s361_s16 = sadd.s32 4294967294, %s558_s14   ;;  %s558_s14 = sphi %s588_s14, %s18_s14   ;;  %s554_s13 = sphi %s586_s13, %s778_s13   ;;  %s550_s12 = sphi %s584_s12, %s777_s12   ;;  %s546_s11 = sphi %s582_s11, %s776_s11   ;;  %s542_s10 = sphi %s580_s10, %s775_s10   ;;  %s538_s9 = sphi %s578_s9, %s774_s9  }
   0x7   : > { %s27_s17 = sadd.s32 1, %s554_s13  ;;  %s39_s18 = sadd.s32 1, %s546_s11 }
   0x8   : > { %p28_p0 = scmp.ge.s32.totalorder %s27_s17, 2  ;;  %p46_p1 = scmp.ne.s32.totalorder %s546_s11, %s542_s10 }
   0x9   : > { %p47_p2 = scmp.eq.s32.totalorder %s558_s14, 0  ;;  %p52_p3 = scmp.ne.s32.totalorder %s542_s10, %s538_s9 }
   0xa   : > { %s780_s17 = smov (%p28_p0, %s27_s17), 0  ;;  %p53_p5 = scmp.eq.s32.totalorder %s360_s15, 0 }
   0xb   : > { %p619_p4 = por %p47_p2, %p46_p1  ;;  %s34_s20 = ssub.s32 %s554_s13, %s780_s17 }
   0xc   : > { %p104_p6 = scmp.eq.s32.totalorder %s360_s15, 1  ;;  %p37_p7 = scmp.eq.s32.totalorder %s34_s20, 0 }
   0xd   : > { %p625_p8 = por %p53_p5, %p52_p3  ;;  %p110_p10 = scmp.eq.s32.totalorder %s361_s16, 1 }
   0xe   : > { %p629_p9 = por %p104_p6, %p46_p1  ;;  %p388_p13 = scmp.lt.s32.totalorder %s558_s14, 2 }
   0xf   : > { %s634_s23 = scalar_select %p37_p7, %s546_s11, %s39_s18  }
  0x10   : > { %s766_s22 = scalar_select %p629_p9, 1, 0 }
  0x11   : > { %p636_p11 = por %p110_p10, %p52_p3  ;;  %s137_s25 = sand.u32 1, %s546_s11  }
  0x12   : > { %s365_s26 = sshll.u32 %s137_s25, 3  ;;  %s366_s27 = sshll.u32 %s554_s13, 7 }
  0x13   : > { %s767_s24 = scalar_select %p636_p11, 1, 0 }
  0x14   : > { %s647_s30 = scalar_lea.hbm %s760_s0, %s366_s27  ;;  %s141_s3 = scalar_lea.vmem [#allocation2], %s365_s26 }
  0x15   : > { %s149_s4 = sshll.u32 %s141_s3, 4  ;;  %p653_p0 = pnand %p388_p13, %p619_p4  ;;  %s649_s4 = int_to_ptr.vmem [resolvable:$true] %s149_s4 }
  0x16   : > { %s138_s6 = scalar_lea.sflag [#allocation3], %s137_s25  ;;  %s446_s7 = scalar_lea.hbm %s647_s30, 128 }
  0x17   : > { %p447_p3 = scmp.ne.s32.totalorder %s647_s30, %s446_s7  ;;  %p448_p5 = pneg %p653_p0 }
  0x18   : > { %s451_s16 = scalar_lea.hbm %s760_s0, 256  ;;  %p452_p4 = scmp.lt.u32.totalorder %s647_s30, %s760_s0 }
  0x19   : > { %p449_p6 = pnand %p448_p5, %p447_p3  ;;  %p453_p10 = scmp.lt.u32.totalorder %s451_s16, %s446_s7 }
  0x1a   : > { %p455_p12 = scmp.lt.u32.totalorder %s446_s7, %s647_s30 }
  0x1b   : > { %p450_p7 = pneg %p449_p6  ;;  %p454_p13 = por %p453_p10, %p452_p4 }
  0x1d   : > { %p456_p1 = por %p455_p12, %p454_p13 }
  0x1f   : > { %p457_p2 = pnand %p456_p1, %p450_p7 }
  0x21   : > { %460 = shalt.err (!%p457_p2)
}
  0x22   : > { %s461_s20 = scalar_lea.vmem %s649_s4, 128  ;;  %s560_s25 = smov [#allocation2]  }
  0x23   : > { %p462_p3 = scmp.ne.s32.totalorder %s649_s4, %s461_s20  ;;  %s466_s26 = sshll.u32 %s560_s25, 4  ;;  %s467_s26 = int_to_ptr.vmem [resolvable:$false] %s466_s26 }
  0x24   : > { %s468_s27 = scalar_lea.vmem %s467_s26, 256  ;;  %p469_p9 = scmp.lt.s32.totalorder %s649_s4, %s467_s26 }
  0x25   : > { %p464_p6 = pnand %p462_p3, %p448_p5  ;;  %p470_p4 = scmp.lt.s32.totalorder %s468_s27, %s461_s20 }
  0x27   : > { %p465_p11 = pneg %p464_p6  ;;  %p471_p10 = por %p470_p4, %p469_p9 }
  0x29   : > { %p472_p12 = pnand %p471_p10, %p465_p11 }
  0x2b   : > { %475 = shalt.err (!%p472_p12)
}
  0x2c   : > { %383 = dma.hbm_to_vmem [thread:$0]  (!%p653_p0), %s647_s30, 128, %s649_s4, %s138_s6  }
  0x2d   : > { %p769_p1 = scmp.lt.s32.totalorder %s558_s14, 3  ;;  %p770_p2 = scmp.ge.s32.totalorder %s558_s14, 1 }
  0x2f   : > { %p155_p5 = pnand %p770_p2, %p769_p1 }
  0x30   : > { %s689_s28 = sand.u32 (!%p155_p5), 1, %s542_s10  }
  0x31   : > { %158 = sbr.rel (%p155_p5) target bundleno = 620 (0x26c), region = 28  ;;  %s368_s29 = sshll.u32 (!%p155_p5), %s689_s28, 3 }
  0x32   : > { %s161_s3 = scalar_lea.sflag (!%p155_p5), [#allocation3], %s689_s28  ;;  %s164_s5 = scalar_lea.vmem (!%p155_p5), [#allocation2], %s368_s29 }
  0x38   : > { %529 = dma.done.wait (%p625_p8), %s161_s3, 128  }
  0x39   : > { %531 = vsyncadd (%p625_p8), %s161_s3, 4294967168  ;;  %v561_v0 = vmov 0   ;;  %vm195_vm0 = vcmask 130048   ;;  %v193_v1 = vld [vmem:[%s164_s5] sm:$0xff]  ;;  %v205_v7 = vlaneseq  ;;  %vm237_vm4 = vcmask 7168   ;;  %s188_s21 = scalar_lea.vmem [#allocation5], %s368_s29 }
  0x3a   : > { %439 = vset.pattern.permute.xlu0 %v561_v0  ;;  %v196_v2 = vsel %vm195_vm0, %v193_v1, -inf  ;;  %v194_v3 = vld [vmem:[%s761_s1] sm:$0xff]  ;;  %s265_s6 = sshll.u32 %s188_s21, 4  ;;  %s371_s7 = sshll.u32 %s550_s12, 7  ;;  %s708_s6 = int_to_ptr.vmem [resolvable:$true] %s265_s6 }
  0x3b   : > { %197 = vmax.xlane.f32.xlu0 %v196_v2  ;;  %v206_v8 = vand.u32 127, %v205_v7  ;;  %s713_s18 = scalar_lea.hbm %s762_s2, %s371_s7  ;;  %s251_s19 = scalar_lea.sflag [#allocation4], %s689_s28 }
  0x3c   : > { %s476_s20 = scalar_lea.vmem %s708_s6, 128  ;;  %p771_p9 = scmp.ne.s32.totalorder %s766_s22, 0 }
  0x3d   : > { %p477_p8 = scmp.ne.s32.totalorder %s708_s6, %s476_s20  ;;  %s562_s12 = smov [#allocation5]  }
  0x3e   : > { %s480_s25 = sshll.u32 %s562_s12, 4  ;;  %s481_s25 = int_to_ptr.vmem [resolvable:$false] %s480_s25 }
  0x3f   : > { %p478_p11 = pnand %p477_p8, %p771_p9  ;;  %s482_s26 = scalar_lea.vmem %s481_s25, 256 }
  0x40   : > { %p483_p7 = scmp.lt.s32.totalorder %s708_s6, %s481_s25  ;;  %p484_p13 = scmp.lt.s32.totalorder %s482_s26, %s476_s20 }
  0x41   : > { %p479_p0 = pneg %p478_p11 }
  0x42   : > { %p485_p3 = por %p484_p13, %p483_p7 }
  0x44   : > { %p486_p6 = pnand %p485_p3, %p479_p0 }
  0x51   : > { %208 = vperm.xlu0 %439, %v194_v3  }
  0xc8   : > { %v198_v4 = vpop.xlane.xlu0 %197 }
  0xc9   : > { %v199_v5 = vsub.f32 %v193_v1, %v198_v4 }
  0xcb   : > { %v200_v6 = vmul.f32 1.442695, %v199_v5 }
  0xcd   : > { %440 = vpow2.f32 %v200_v6 }
  0xd0   : > { %v209_v9 = vpop.permute.xlu0 %208 }
  0xd1   : > { %vm210_vm1 = vcmp.eq.s32.totalorder %v206_v8, %v209_v9 }
  0xd2   : > { %v211_v12 = vsel %vm210_vm1, %v199_v5, 0.0 }
  0xd3   : > { %v212_v13 = vsel %vm195_vm0, %v211_v12, 0.0 }
  0xd7   : > { %v441_v10 = vpop.eup %440 }
  0xd8   : > { %v202_v11 = vsel %vm195_vm0, %v441_v10, 0.0 }
  0xd9   : > { %203 = vadd.xlane.f32.xlu1 %v202_v11 }
  0xdd   : > { %213 = vadd.xlane.f32.xlu1 %v212_v13 }
 0x166   : > { %v204_v14 = vpop.xlane.xlu1 %203 }
 0x167   : > { %442 = vlog2.f32 %v204_v14 }
 0x16a   : > { %v214_v17 = vpop.xlane.xlu1 %213 }
 0x171   : > { %v443_v15 = vpop.eup %442 }
 0x172   : > { %v216_v16 = vmul.f32 0.6931472, %v443_v15 }
 0x174   : > { %v217_v18 = vsub.f32 %v214_v17, %v216_v16 }
 0x176   : > { %v218_v19 = vmul.f32 1.442695, %v217_v18 }
 0x178   : > { %444 = vpow2.f32 %v218_v19 }
 0x182   : > { %v445_v20 = vpop.eup %444 }
 0x183   : > { %v220_v21 = vsub.f32 1.0, %v445_v20  ;;  %vm225_vm2 = vcmp.lt.f32.partialorder %v445_v20, 0.5  ;;  %vm224_vm3 = vcmp.lt.f32.partialorder %v445_v20, 0.2 }
 0x185   : > { %v221_v22 = vmul.f32 %v220_v21, %v220_v21 }
 0x187   : > { %v222_v23 = vmul.f32 %v221_v22, %v220_v21 }
 0x189   : > { %v223_v24 = vmul.f32 %v222_v23, %v221_v22  ;;  %v226_v25 = vsel %vm225_vm2, %v222_v23, %v220_v21 }
 0x18b   : > { %v227_v26 = vsel %vm224_vm3, %v223_v24, %v226_v25 }
 0x18c   : > { %v228_v27 = vsub.f32 0.0, %v227_v26 }
 0x18e   : > { %v229_v28 = vmul.f32 %v228_v27, %v217_v18 }
 0x190   : > { %v238_v29 = vsel %vm237_vm4, %v229_v28, 0.0 }
 0x191   : > { %239 = vadd.xlane.f32.xlu1 %v238_v29 }
 0x21e   : > { %v240_v30 = vpop.xlane.xlu1 %239 }
 0x21f   : > { %v241_v31 = vrot.slane %v240_v30, 4 }
 0x221   : > { %v242_v32 = vadd.f32 %v241_v31, %v240_v30 }
 0x223   : > { %v243_v33 = vrot.slane %v242_v32, 2 }
 0x225   : > { %v244_v34 = vadd.f32 %v243_v33, %v242_v32 }
 0x227   : > { %v245_v35 = vrot.slane %v244_v34, 1 }
 0x229   : > { %v246_v36 = vadd.f32 %v245_v35, %v244_v34 }
 0x22b   : > { %374 = vpush %v246_v36 }
 0x25c   : > { %s375_s8 = spop %374 }
 0x25d   : > { %v248_v37 = vstv %s375_s8 }
 0x25e   : > { %249 = vst [vmem:[%s188_s21] sm:$0xff] %v248_v37 }
 0x25f   : > { %489 = shalt.err (!%p486_p6)
}
 0x260   : > { %s490_s27 = scalar_lea.hbm %s713_s18, 128  ;;  %s494_s3 = scalar_lea.hbm %s762_s2, 256 }
 0x261   : > { %p491_p4 = scmp.ne.s32.totalorder %s713_s18, %s490_s27  ;;  %p495_p1 = scmp.lt.u32.totalorder %s713_s18, %s762_s2 }
 0x262   : > { %p496_p2 = scmp.lt.u32.totalorder %s494_s3, %s490_s27  ;;  %p498_p8 = scmp.lt.u32.totalorder %s490_s27, %s713_s18 }
 0x263   : > { %p492_p10 = pnand %p491_p4, %p771_p9 }
 0x264   : > { %p497_p5 = por %p496_p2, %p495_p1 }
 0x265   : > { %p493_p12 = pneg %p492_p10 }
 0x266   : > { %p499_p11 = por %p498_p8, %p497_p5 }
 0x268   : > { %p500_p0 = pnand %p499_p11, %p493_p12 }
 0x26a   : > { %503 = shalt.err (!%p500_p0)
}
 0x26b   : > { %378 = dma.vmem_to_hbm [thread:$0]  (%p771_p9), %s708_s6, 128, %s713_s18, %s251_s19  }
 0x26c PF: > { %s277_s4 = sand.u32 1, %s538_s9   ;;  %p772_p7 = scmp.ne.s32.totalorder %s767_s24, 0 }
 0x26d   : > { %p773_p13 = scmp.ge.s32.totalorder %s558_s14, 2  ;;  %s278_s21 = scalar_lea.sflag [#allocation4], %s277_s4 }
 0x26f   : > { %p385_p3 = pnand %p773_p13, %p772_p7 }
 0x271   : > { %533 = dma.done.wait (!%p385_p3), %s278_s21, 128  }
 0x272   : > { %535 = vsyncadd (!%p385_p3), %s278_s21, 4294967168  ;;  %s18_s14 = sadd.s32 1, %s558_s14   ;;  %s774_s9 = smov %s542_s10 }
 0x273   : > { %p15_p6 = scmp.ge.s32.totalorder %s18_s14, 4   ;;  %s775_s10 = smov %s546_s11 }
 0x274   : > { %s776_s11 = smov %s634_s23  ;;  %s777_s12 = smov %s554_s13 }
 0x275   : > { %s778_s13 = smov %s780_s17  ;;  %17 = sbr.rel (!%p15_p6) target bundleno = 6 (0x6), region = 76 }
 0x27c   :  { %283 = vsyncpa [#allocation3], 1 }
 0x27d   :  { %285 = vsyncpa [#allocation3 + $0x1], 1 }
 0x27e   :  { %286 = vsyncpa [#allocation4], 1 }
 0x27f   :  { %288 = vsyncpa [#allocation4 + $0x1], 1 }

</bundles_post_ra>
